<compile_context>
chip_gen: v7x
topology: tpu7x:2x2x1
jax: 0.10.0
libtpu: 0.0.40
codegen_flags: <defaults>
</compile_context>

<pallas_src>
import jax
import jax.numpy as jnp
from jax.experimental import pallas as pl
from jax.experimental.pallas import tpu as pltpu


def _round_up(n, m):
    return ((n + m - 1) // m) * m


def _mlp_kernel(x_ref, w1_ref, b1_ref, w2_ref, b2_ref, o_ref):
    # fc1 / fc2 on the MXU with f32 accumulation; bias add + ReLU on the VPU in f32.
    w1 = w1_ref[...]
    w2 = w2_ref[...]
    x = x_ref[...].astype(w1.dtype)  # no-op in the default f32 path

    h = jnp.dot(x, w1, preferred_element_type=jnp.float32) + b1_ref[...].astype(jnp.float32)
    h = jnp.maximum(h, 0.0)  # elementwise stays f32 (no bf16 VPU on v5e)

    y = jnp.dot(h.astype(w2.dtype), w2, preferred_element_type=jnp.float32)
    y = y + b2_ref[...].astype(jnp.float32)
    o_ref[...] = y.astype(o_ref.dtype)


def prepare_params(w1, b1, w2, b2, mxu_dtype=None):
    """One-time (init / param-update time) parameter prep.

    Optionally pre-casts the weight matrices to an MXU operand dtype
    (e.g. jnp.bfloat16 — fine on v5e/v6e/v7x; accumulation stays f32 in-kernel,
    but loosen test tolerances if enabled). Biases stay f32 for the f32
    bias-add / ReLU path. Hoisted out of the forward path so the hot path is a
    single pallas_call with no extra HLOs.
    """
    if mxu_dtype is not None:
        w1 = w1.astype(mxu_dtype)
        w2 = w2.astype(mxu_dtype)
    return w1, b1, w2, b2


def linear_qnetwork_forward(x, w1, b1, w2, b2, *, tile_b=2048):
    """Fused forward pass of LinearQNetwork.

    x : (B, input_size)
    w1: (input_size, hidden_size)   (transposed vs. PyTorch's (hidden, in))
    b1: (1, hidden_size)
    w2: (hidden_size, output_size)
    b2: (1, output_size)
    """
    B, in_size = x.shape
    hid = w1.shape[1]
    out_size = w2.shape[1]
    assert w1.shape[0] == in_size and w2.shape[0] == hid
    assert b1.shape == (1, hid) and b2.shape == (1, out_size)

    # Batch tile: single full-batch block when it fits (full-dim block is always
    # legal, degenerate 1-step grid), otherwise a multiple-of-8 tile with a
    # ragged (clipped) final block. Weights/biases use a constant index_map so
    # they stay resident in VMEM across all grid steps.
    tile_b = max(8, _round_up(tile_b, 8))
    tb = B if B <= tile_b else tile_b
    grid = (pl.cdiv(B, tb),)

    return pl.pallas_call(
        _mlp_kernel,
        out_shape=jax.ShapeDtypeStruct((B, out_size), x.dtype),
        grid=grid,
        in_specs=[
            # x: tiled over batch -> auto double-buffered HBM->VMEM DMA.
            pl.BlockSpec((tb, in_size), lambda i: (i, 0)),
            # Weights / biases: constant index_map -> resident across steps.
            pl.BlockSpec((in_size, hid), lambda i: (0, 0)),
            pl.BlockSpec((1, hid), lambda i: (0, 0)),
            pl.BlockSpec((hid, out_size), lambda i: (0, 0)),
            pl.BlockSpec((1, out_size), lambda i: (0, 0)),
        ],
        out_specs=pl.BlockSpec((tb, out_size), lambda i: (i, 0)),
        compiler_params=pltpu.CompilerParams(
            dimension_semantics=("parallel",),  # megacore sharding on v7x
        ),
    )(x, w1, b1, w2, b2)


def init_params(key, input_size, hidden_size, output_size, dtype=jnp.float32):
    """Deterministic init mimicking torch.nn.Linear's U(-1/sqrt(fan_in), 1/sqrt(fan_in))."""
    k1, k2, k3, k4 = jax.random.split(key, 4)
    bound1 = 1.0 / jnp.sqrt(input_size)
    bound2 = 1.0 / jnp.sqrt(hidden_size)
    w1 = jax.random.uniform(k1, (input_size, hidden_size), dtype, -bound1, bound1)
    b1 = jax.random.uniform(k2, (1, hidden_size), dtype, -bound1, bound1)
    w2 = jax.random.uniform(k3, (hidden_size, output_size), dtype, -bound2, bound2)
    b2 = jax.random.uniform(k4, (1, output_size), dtype, -bound2, bound2)
    return w1, b1, w2, b2


if __name__ == "__main__":
    key = jax.random.PRNGKey(0)
    kx, kp = jax.random.split(key)

    batch, input_size, hidden_size, output_size = 8, 16, 32, 4
    x = jax.random.normal(kx, (batch, input_size), jnp.float32)
    w1, b1, w2, b2 = init_params(kp, input_size, hidden_size, output_size)
    w1, b1, w2, b2 = prepare_params(w1, b1, w2, b2)  # f32 path (no cast)

    # Small-batch check (single, degenerate grid step).
    out = jax.block_until_ready(linear_qnetwork_forward(x, w1, b1, w2, b2))
    ref = jnp.maximum(x @ w1 + b1, 0.0) @ w2 + b2
    assert out.shape == (batch, output_size)
    assert jnp.allclose(out, ref, atol=1e-5, rtol=1e-5)

    # Larger-batch check: multi-step pipelined grid with a ragged (clipped)
    # final block (1000 = 3*256 + 232), no per-call padding/slicing.
    x_big = jax.random.normal(kx, (1000, input_size), jnp.float32)
    out_big = jax.block_until_ready(
        linear_qnetwork_forward(x_big, w1, b1, w2, b2, tile_b=256))
    ref_big = jnp.maximum(x_big @ w1 + b1, 0.0) @ w2 + b2
    assert out_big.shape == (1000, output_size)
    assert jnp.allclose(out_big, ref_big, atol=1e-5, rtol=1e-5)

    # TODO(synk): the PyTorch module's save() (torch.save to disk) has no kernel
    # equivalent and is intentionally omitted.

    print("KERNEL_OK")
</pallas_src>

<mosaic_0001>
module attributes {stable_mosaic.version = 11 : i64} {
  func.func @_mlp_kernel(%arg0: i32, %arg1: memref<8x16xf32, #tpu.memory_space<vmem>>, %arg2: memref<16x32xf32, #tpu.memory_space<vmem>>, %arg3: memref<1x32xf32, #tpu.memory_space<vmem>>, %arg4: memref<32x4xf32, #tpu.memory_space<vmem>>, %arg5: memref<1x4xf32, #tpu.memory_space<vmem>>, %arg6: memref<8x4xf32, #tpu.memory_space<vmem>>) attributes {dimension_semantics = [#tpu.dimension_semantics<parallel>], iteration_bounds = array<i64: 1>, scalar_prefetch = 0 : i64, scratch_operands = 0 : i64, tpu.core_type = #tpu.core_type<tc>, window_params = [{transform_indices = @transform_0, window_bounds = array<i64: 8, 16>}, {pipeline_mode = #tpu.pipeline_mode<synchronous>, transform_indices = @transform_1, window_bounds = array<i64: 16, 32>}, {pipeline_mode = #tpu.pipeline_mode<synchronous>, transform_indices = @transform_2, window_bounds = array<i64: 1, 32>}, {pipeline_mode = #tpu.pipeline_mode<synchronous>, transform_indices = @transform_3, window_bounds = array<i64: 32, 4>}, {pipeline_mode = #tpu.pipeline_mode<synchronous>, transform_indices = @transform_4, window_bounds = array<i64: 1, 4>}, {transform_indices = @transform_5, window_bounds = array<i64: 8, 4>}]} {
    %c0 = arith.constant 0 : index
    %c0_0 = arith.constant 0 : index
    %0 = vector.load %arg2[%c0, %c0_0] : memref<16x32xf32, #tpu.memory_space<vmem>>, vector<16x32xf32>
    %c0_1 = arith.constant 0 : index
    %c0_2 = arith.constant 0 : index
    %1 = vector.load %arg4[%c0_1, %c0_2] : memref<32x4xf32, #tpu.memory_space<vmem>>, vector<32x4xf32>
    %c0_3 = arith.constant 0 : index
    %c0_4 = arith.constant 0 : index
    %2 = vector.load %arg1[%c0_3, %c0_4] : memref<8x16xf32, #tpu.memory_space<vmem>>, vector<8x16xf32>
    %cst = arith.constant dense<0.000000e+00> : vector<8x32xf32>
    %3 = tpu.matmul %2, %0, %cst {dimension_numbers = #tpu.dot_dimension_numbers<[1], [0], [0], [1], [0, 0, 1, 1], [], []>} : vector<8x16xf32>, vector<16x32xf32>, vector<8x32xf32> -> vector<8x32xf32>
    %c0_5 = arith.constant 0 : index
    %c0_6 = arith.constant 0 : index
    %4 = vector.load %arg3[%c0_5, %c0_6] : memref<1x32xf32, #tpu.memory_space<vmem>>, vector<1x32xf32>
    %5 = vector.broadcast %4 : vector<1x32xf32> to vector<8x32xf32>
    %6 = arith.addf %3, %5 : vector<8x32xf32>
    %cst_7 = arith.constant 0.000000e+00 : f32
    %7 = vector.broadcast %cst_7 : f32 to vector<8x32xf32>
    %8 = arith.maximumf %6, %7 : vector<8x32xf32>
    %cst_8 = arith.constant dense<0.000000e+00> : vector<8x4xf32>
    %9 = tpu.matmul %8, %1, %cst_8 {dimension_numbers = #tpu.dot_dimension_numbers<[1], [0], [0], [1], [0, 0, 1, 1], [], []>} : vector<8x32xf32>, vector<32x4xf32>, vector<8x4xf32> -> vector<8x4xf32>
    %c0_9 = arith.constant 0 : index
    %c0_10 = arith.constant 0 : index
    %10 = vector.load %arg5[%c0_9, %c0_10] : memref<1x4xf32, #tpu.memory_space<vmem>>, vector<1x4xf32>
    %11 = vector.broadcast %10 : vector<1x4xf32> to vector<8x4xf32>
    %12 = arith.addf %9, %11 : vector<8x4xf32>
    %c0_11 = arith.constant 0 : index
    %c0_12 = arith.constant 0 : index
    %13 = vector.load %arg6[%c0_11, %c0_12] : memref<8x4xf32, #tpu.memory_space<vmem>>, vector<8x4xf32>
    tpu.vector_store %arg6[%c0_11, %c0_12], %12 {strides = array<i32>} : memref<8x4xf32, #tpu.memory_space<vmem>>, vector<8x4xf32>,
    return
  }
  func.func @transform_0(%arg0: i32) -> (i32, i32) {
    %c0_i32 = arith.constant 0 : i32
    %c0_i32_0 = arith.constant 0 : i32
    return %arg0, %c0_i32 : i32, i32
  }
  func.func @transform_1(%arg0: i32) -> (i32, i32) {
    %c0_i32 = arith.constant 0 : i32
    %c0_i32_0 = arith.constant 0 : i32
    %c0_i32_1 = arith.constant 0 : i32
    return %c0_i32, %c0_i32_0 : i32, i32
  }
  func.func @transform_2(%arg0: i32) -> (i32, i32) {
    %c0_i32 = arith.constant 0 : i32
    %c0_i32_0 = arith.constant 0 : i32
    %c0_i32_1 = arith.constant 0 : i32
    return %c0_i32, %c0_i32_0 : i32, i32
  }
  func.func @transform_3(%arg0: i32) -> (i32, i32) {
    %c0_i32 = arith.constant 0 : i32
    %c0_i32_0 = arith.constant 0 : i32
    %c0_i32_1 = arith.constant 0 : i32
    return %c0_i32, %c0_i32_0 : i32, i32
  }
  func.func @transform_4(%arg0: i32) -> (i32, i32) {
    %c0_i32 = arith.constant 0 : i32
    %c0_i32_0 = arith.constant 0 : i32
    %c0_i32_1 = arith.constant 0 : i32
    return %c0_i32, %c0_i32_0 : i32, i32
  }
  func.func @transform_5(%arg0: i32) -> (i32, i32) {
    %c0_i32 = arith.constant 0 : i32
    %c0_i32_0 = arith.constant 0 : i32
    return %arg0, %c0_i32 : i32, i32
  }
}

</mosaic_0001>

<bundles_post_ra>
// kernel: tpu_custom_call.1
= control target key start
LH: loop header
LB: loop body
LE: loop exit
PB: predicated region body
PF: predicated region fallthrough
CT: control target
= control target key end

     0   :  { %v238_v0 = vmov 0.0|0.0   ;;  %vm239_vm0 = vmmov 0   ;;  %v240_v3 = vmov 0.0   ;;  %vm34_vm1 = vcmask 130048   ;;  %s301_s1 = inlined_call_operand.vmem [shape: f32[16,32], index: 1, kind: input, shape index: {}]   ;;  %s302_s3 = inlined_call_operand.vmem [shape: f32[32,4], index: 3, kind: input, shape index: {}]   ;;  %s303_s0 = inlined_call_operand.vmem [shape: f32[8,16], index: 0, kind: input, shape index: {}]   ;;  %s304_s2 = inlined_call_operand.vmem [shape: f32[1,32], index: 2, kind: input, shape index: {}]   ;;  %s305_s4 = inlined_call_operand.vmem [shape: f32[1,4], index: 4, kind: input, shape index: {}]   ;;  %s306_s5 = inlined_call_operand.vmem [shape: f32[8,4], index: 5, kind: output, shape index: {}]  }
   0x1   :  { %226 = vmatprep.subr.bf16.mxu0 %v238_v0  ;;  %v20_v1 = vld [vmem:[%s301_s1] sm:$0xff]  ;;  %v21_v2 = vld [vmem:[%s301_s1 + $0x8] sm:$0xff]  ;;  %212 = vmatprep.mubr.msk.f32.mxu0 %vm239_vm0, %v240_v3  ;;  %v24_v9 = vld [vmem:[%s302_s3 + $0x10] sm:$0xff]  ;;  %vm116_vm2 = vcmask 261120   ;;  %vm190_vm3 = vcmask 31744  }
   0x2   :  { %v227_v4 = vpack.c.bf16 %v21_v2, %v20_v1  ;;  %229 = vmatprep.subr.bf16.mxu1 %v238_v0  ;;  %v22_v5 = vld [vmem:[%s302_s3] sm:$0xff]  ;;  %v23_v6 = vld [vmem:[%s302_s3 + $0x8] sm:$0xff]  ;;  %223 = vmatprep.mubr.msk.f32.mxu1 %vm239_vm0, %v240_v3  ;;  %v25_v10 = vld [vmem:[%s302_s3 + $0x18] sm:$0xff] }
   0x3   :  { %v230_v7 = vpack.c.bf16 %v23_v6, %v22_v5  ;;  %v26_v8 = vld [vmem:[%s303_s0] sm:$0xff]  ;;  %v233_v11 = vpack.c.bf16 %v25_v10, %v24_v9 }
   0x4   :  { %228 = vmatpush3.bf16.msra.mxu0 %v227_v4  ;;  %v196_v12 = vld [vmem:[%s304_s2] ss:$0 sm:$0xff] }
   0x5   :  { %231 = vmatpush3.bf16.msra.mxu1 %v230_v7  ;;  %v198_v17 = vld [vmem:[%s305_s4] ss:$0 sm:$0xff] }
   0x6   :  { %232 = vmatprep.subr.bf16.mxu1 %v238_v0 }
   0x7   :  { %213 = vmatmul.mubr.msk.f32.vlgmr.msra.gmra.mrb[0].mxu0 %vm34_vm1, %v26_v8 }
   0x9   :  { %234 = vmatpush3.bf16.msra.mxu1 %v233_v11 }
  0xda   :  { %v104_v13 = vpop.f32.mrb[0].mxu0 }
  0xdb   :  { %v105_v14 = vadd.f32 %v196_v12, %v104_v13  ;;  %v214_v15 = vpop.f32.mrb[1].mxu0 }
  0xdd   :  { %v108_v16 = vmax.f32 %v105_v14, 0.0 }
  0xdf   :  { %224 = vmatmul.mubr.msk.f32.vlgmr.msra.gmra.mrb[0].mxu1 %vm116_vm2, %v108_v16 }
 0x1b2   :  { %v186_v18 = vpop.f32.mrb[0].mxu1 }
 0x1b3   :  { %v187_v19 = vadd.f32 %v198_v17, %v186_v18  ;;  %v225_v20 = vpop.f32.mrb[1].mxu1 }
 0x1b5   :  { %191 = vst.msk [vmem:[%s306_s5] sm:$0xff] %vm190_vm3, %v187_v19 }

</bundles_post_ra>
